<compile_context>
chip_gen: v7x
topology: tpu7x:2x2x1
jax: 0.10.0
libtpu: 0.0.40
codegen_flags: <defaults>
</compile_context>

<pallas_src>
import jax
import jax.numpy as jnp
from jax.experimental import pallas as pl
from jax.experimental.pallas import tpu as pltpu

BETA = 1.0        # module default
LANES = 1024      # lane-dense last dim (multiple of 128)
TILE_ROWS = 256   # 256 x 1024 f32 = 1 MiB per tile per buffer


def _make_swish_kernel(beta):
    def kernel(x_ref, o_ref):
        x = x_ref[...].astype(jnp.float32)
        z = x if beta == 1.0 else beta * x          # compile-time branch
        o_ref[...] = (x * jax.nn.sigmoid(z)).astype(o_ref.dtype)
    return kernel


def swish(x, *, beta=BETA, lanes=LANES, tile_rows=TILE_ROWS):
    """Elementwise Swish for any input shape/size (pads + slices internally)."""
    orig_shape = x.shape
    orig_dtype = x.dtype
    total = x.size

    flat = x.reshape(-1)

    # Rows of the lane-dense slab; shrink the row tile for small inputs
    # (multiple of 8 sublanes), pad rows up to a multiple of the tile.
    rows = pl.cdiv(total, lanes)
    rows8 = max(8, pl.cdiv(rows, 8) * 8)
    tr = min(tile_rows, rows8)
    padded_rows = pl.cdiv(rows, tr) * tr
    padded_total = padded_rows * lanes

    pad = padded_total - total
    if pad:
        flat = jnp.pad(flat, (0, pad))
    x2 = flat.reshape(padded_rows, lanes)

    out2 = pl.pallas_call(
        _make_swish_kernel(beta),
        out_shape=jax.ShapeDtypeStruct((padded_rows, lanes), orig_dtype),
        grid_spec=pltpu.PrefetchScalarGridSpec(
            num_scalar_prefetch=0,
            grid=(padded_rows // tr,),
            in_specs=[pl.BlockSpec((tr, lanes), lambda i: (i, 0))],
            out_specs=pl.BlockSpec((tr, lanes), lambda i: (i, 0)),
        ),
        compiler_params=pltpu.CompilerParams(
            dimension_semantics=("parallel",),
        ),
    )(x2)

    out_flat = out2.reshape(-1)
    if pad:
        out_flat = out_flat[:total]
    return out_flat.reshape(orig_shape)


if __name__ == "__main__":
    key = jax.random.PRNGKey(0)
    x = jax.random.normal(key, (2, 4, 16, 16), dtype=jnp.float32)  # NCHW

    y = swish(x)
    jax.block_until_ready(y)

    # Reference check against plain JAX (same semantics as the torch module).
    y_ref = x * jax.nn.sigmoid(BETA * x)
    assert y.shape == x.shape and y.dtype == x.dtype
    assert jnp.max(jnp.abs(y - y_ref)) < 1e-5

    # Also exercise a shape NOT divisible by 128 to verify the pad/slice path.
    x2 = jax.random.normal(jax.random.PRNGKey(1), (3, 5, 7, 11), dtype=jnp.float32)
    y2 = swish(x2)
    jax.block_until_ready(y2)
    y2_ref = x2 * jax.nn.sigmoid(BETA * x2)
    assert jnp.max(jnp.abs(y2 - y2_ref)) < 1e-5

    print("KERNEL_OK")
</pallas_src>

<mosaic_0001>
module attributes {stable_mosaic.version = 11 : i64} {
  func.func @kernel(%arg0: i32, %arg1: memref<8x1024xf32, #tpu.memory_space<vmem>>, %arg2: memref<8x1024xf32, #tpu.memory_space<vmem>>) attributes {dimension_semantics = [#tpu.dimension_semantics<parallel>], iteration_bounds = array<i64: 1>, scalar_prefetch = 0 : i64, scratch_operands = 0 : i64, tpu.core_type = #tpu.core_type<tc>, window_params = [{transform_indices = @transform_0, window_bounds = array<i64: 8, 1024>}, {transform_indices = @transform_1, window_bounds = array<i64: 8, 1024>}]} {
    %c0 = arith.constant 0 : index
    %c0_0 = arith.constant 0 : index
    %0 = vector.load %arg1[%c0, %c0_0] : memref<8x1024xf32, #tpu.memory_space<vmem>>, vector<8x1024xf32>
    %1 = arith.negf %0 : vector<8x1024xf32>
    %2 = math.exp %1 : vector<8x1024xf32>
    %cst = arith.constant 1.000000e+00 : f32
    %3 = vector.broadcast %cst : f32 to vector<8x1024xf32>
    %4 = arith.addf %3, %2 : vector<8x1024xf32>
    %5 = arith.divf %3, %4 : vector<8x1024xf32>
    %6 = arith.mulf %0, %5 : vector<8x1024xf32>
    %c0_1 = arith.constant 0 : index
    %c0_2 = arith.constant 0 : index
    %7 = vector.load %arg2[%c0_1, %c0_2] : memref<8x1024xf32, #tpu.memory_space<vmem>>, vector<8x1024xf32>
    tpu.vector_store %arg2[%c0_1, %c0_2], %6 {strides = array<i32>} : memref<8x1024xf32, #tpu.memory_space<vmem>>, vector<8x1024xf32>,
    return
  }
  func.func @transform_0(%arg0: i32) -> (i32, i32) {
    %c0_i32 = arith.constant 0 : i32
    %c0_i32_0 = arith.constant 0 : i32
    return %arg0, %c0_i32 : i32, i32
  }
  func.func @transform_1(%arg0: i32) -> (i32, i32) {
    %c0_i32 = arith.constant 0 : i32
    %c0_i32_0 = arith.constant 0 : i32
    return %arg0, %c0_i32 : i32, i32
  }
}

</mosaic_0001>

<bundles_post_ra>
// kernel: tpu_custom_call.1
= control target key start
LH: loop header
LB: loop body
LE: loop exit
PB: predicated region body
PF: predicated region fallthrough
CT: control target
= control target key end

     0   :  { %6 = vsyncpa [#allocation3], 0  ;;  %s234_s0 = inlined_call_operand.hbm [shape: f32[8,1024], index: 0, kind: input, shape index: {}]   ;;  %s235_s1 = inlined_call_operand.hbm [shape: f32[8,1024], index: 1, kind: output, shape index: {}]  }
   0x1   :  { %7 = vsyncpa [#allocation4], 0  ;;  %s198_s6 = smov [#allocation2]   ;;  %s150_s10 = scalar_lea.hbm %s234_s0, 1024 }
   0x2   :  { %s14_s7 = sshll.u32 %s198_s6, 4  ;;  %p151_p0 = scmp.ne.s32.totalorder %s234_s0, %s150_s10  ;;  %s15_s7 = int_to_ptr.vmem [resolvable:$true] %s14_s7 }
   0x3   :  { %p154_p1 = scmp.lt.u32.totalorder %s150_s10, %s234_s0 }
   0x5   :  { %p156_p2 = pnand %p154_p1, %p151_p0 }
   0x7   :  { %159 = shalt.err (!%p156_p2)
}
   0x8   :  { %s160_s15 = scalar_lea.vmem %s15_s7, 1024  ;;  %p165_p4 = scmp.lt.s32.totalorder %s15_s7, %s15_s7 }
   0x9   :  { %p161_p3 = scmp.ne.s32.totalorder %s15_s7, %s160_s15  ;;  %p166_p5 = scmp.lt.s32.totalorder %s160_s15, %s160_s15 }
   0xb   :  { %p167_p6 = por %p166_p5, %p165_p4 }
   0xd   :  { %p168_p7 = pnand %p167_p6, %p161_p3 }
   0xf   :  { %171 = shalt.err (!%p168_p7)
}
  0x10   :  { %17 = dma.hbm_to_vmem [thread:$0]  %s234_s0, 1024, %s15_s7, [#allocation3]  }
  0x11   :  { %194 = dma.done.wait [#allocation3], 1024  }
  0x12   :  { %195 = vsyncadd [#allocation3], 4294966272  ;;  %v21_v0 = vld [vmem:[#allocation2] sm:$0xff]  ;;  %v22_v1 = vld [vmem:[#allocation2 + $0x8] sm:$0xff]  ;;  %s199_s0 = smov [#allocation5]  }
  0x13   :  { %v23_v2 = vld [vmem:[#allocation2 + $0x10] sm:$0xff]  ;;  %v108_v3 = vmul.f32 -1.442695, %v21_v0  ;;  %v109_v4 = vmul.f32 -1.442695, %v22_v1  ;;  %v24_v6 = vld [vmem:[#allocation2 + $0x18] sm:$0xff] }
  0x14   :  { %v110_v5 = vmul.f32 -1.442695, %v23_v2  ;;  %v25_v7 = vld [vmem:[#allocation2 + $0x20] sm:$0xff]  ;;  %v26_v8 = vld [vmem:[#allocation2 + $0x28] sm:$0xff]  ;;  %v111_v9 = vmul.f32 -1.442695, %v24_v6 }
  0x15   :  { %118 = vpow2.f32 %v108_v3  ;;  %v112_v10 = vmul.f32 -1.442695, %v25_v7  ;;  %v113_v11 = vmul.f32 -1.442695, %v26_v8  ;;  %v27_v12 = vld [vmem:[#allocation2 + $0x30] sm:$0xff]  ;;  %v28_v13 = vld [vmem:[#allocation2 + $0x38] sm:$0xff] }
  0x16   :  { %120 = vpow2.f32 %v109_v4  ;;  %v114_v14 = vmul.f32 -1.442695, %v27_v12  ;;  %v115_v15 = vmul.f32 -1.442695, %v28_v13  ;;  %s99_s18 = sshll.u32 %s199_s0, 4  ;;  %s100_s18 = int_to_ptr.vmem [resolvable:$true] %s99_s18 }
  0x17   :  { %122 = vpow2.f32 %v110_v5  ;;  %s172_s19 = scalar_lea.vmem %s100_s18, 1024  ;;  %p177_p9 = scmp.lt.s32.totalorder %s100_s18, %s100_s18 }
  0x18   :  { %124 = vpow2.f32 %v111_v9  ;;  %p173_p8 = scmp.ne.s32.totalorder %s100_s18, %s172_s19  ;;  %p178_p10 = scmp.lt.s32.totalorder %s172_s19, %s172_s19 }
  0x19   :  { %126 = vpow2.f32 %v112_v10 }
  0x1a   :  { %128 = vpow2.f32 %v113_v11  ;;  %p179_p11 = por %p178_p10, %p177_p9 }
  0x1b   :  { %130 = vpow2.f32 %v114_v14 }
  0x1c   :  { %132 = vpow2.f32 %v115_v15  ;;  %p180_p12 = pnand %p179_p11, %p173_p8 }
  0x1f   :  { %v119_v16 = vpop.eup %118 }
  0x20   :  { %v121_v17 = vpop.eup %120  ;;  %v53_v18 = vadd.f32 1.0, %v119_v16 }
  0x21   :  { %v123_v19 = vpop.eup %122  ;;  %v54_v20 = vadd.f32 1.0, %v121_v17 }
  0x22   :  { %v125_v21 = vpop.eup %124  ;;  %134 = vrcp.f32 %v53_v18  ;;  %v55_v22 = vadd.f32 1.0, %v123_v19 }
  0x23   :  { %v127_v23 = vpop.eup %126  ;;  %136 = vrcp.f32 %v54_v20  ;;  %v56_v24 = vadd.f32 1.0, %v125_v21 }
  0x24   :  { %v129_v25 = vpop.eup %128  ;;  %138 = vrcp.f32 %v55_v22  ;;  %v57_v26 = vadd.f32 1.0, %v127_v23 }
  0x25   :  { %v131_v27 = vpop.eup %130  ;;  %140 = vrcp.f32 %v56_v24  ;;  %v58_v28 = vadd.f32 1.0, %v129_v25 }
  0x26   :  { %v133_v29 = vpop.eup %132  ;;  %142 = vrcp.f32 %v57_v26  ;;  %v59_v30 = vadd.f32 1.0, %v131_v27 }
  0x27   :  { %144 = vrcp.f32 %v58_v28  ;;  %v60_v31 = vadd.f32 1.0, %v133_v29 }
  0x28   :  { %146 = vrcp.f32 %v59_v30 }
  0x29   :  { %148 = vrcp.f32 %v60_v31 }
  0x2c   :  { %v135_v32 = vpop.eup %134 }
  0x2d   :  { %v137_v33 = vpop.eup %136  ;;  %v77_v34 = vmul.f32 %v135_v32, %v21_v0 }
  0x2e   :  { %v139_v35 = vpop.eup %138  ;;  %v78_v36 = vmul.f32 %v137_v33, %v22_v1 }
  0x2f   :  { %v141_v37 = vpop.eup %140  ;;  %85 = vst [vmem:[#allocation5] sm:$0xff] %v77_v34  ;;  %v79_v38 = vmul.f32 %v139_v35, %v23_v2 }
  0x30   :  { %v143_v39 = vpop.eup %142  ;;  %86 = vst [vmem:[#allocation5 + $0x8] sm:$0xff] %v78_v36  ;;  %v80_v40 = vmul.f32 %v141_v37, %v24_v6 }
  0x31   :  { %v145_v41 = vpop.eup %144  ;;  %87 = vst [vmem:[#allocation5 + $0x10] sm:$0xff] %v79_v38  ;;  %v81_v42 = vmul.f32 %v143_v39, %v25_v7 }
  0x32   :  { %v147_v43 = vpop.eup %146  ;;  %88 = vst [vmem:[#allocation5 + $0x18] sm:$0xff] %v80_v40  ;;  %v82_v44 = vmul.f32 %v145_v41, %v26_v8 }
  0x33   :  { %v149_v45 = vpop.eup %148  ;;  %89 = vst [vmem:[#allocation5 + $0x20] sm:$0xff] %v81_v42  ;;  %v83_v46 = vmul.f32 %v147_v43, %v27_v12 }
  0x34   :  { %90 = vst [vmem:[#allocation5 + $0x28] sm:$0xff] %v82_v44  ;;  %v84_v47 = vmul.f32 %v149_v45, %v28_v13 }
  0x35   :  { %91 = vst [vmem:[#allocation5 + $0x30] sm:$0xff] %v83_v46 }
  0x36   :  { %92 = vst [vmem:[#allocation5 + $0x38] sm:$0xff] %v84_v47 }
  0x37   :  { %183 = shalt.err (!%p180_p12)
}
  0x38   :  { %s184_s22 = scalar_lea.hbm %s235_s1, 1024 }
  0x39   :  { %p185_p13 = scmp.ne.s32.totalorder %s235_s1, %s184_s22  ;;  %p188_p0 = scmp.lt.u32.totalorder %s184_s22, %s235_s1 }
  0x3b   :  { %p190_p1 = pnand %p188_p0, %p185_p13 }
  0x3d   :  { %193 = shalt.err (!%p190_p1)
}
  0x3e   :  { %102 = dma.vmem_to_hbm [thread:$0]  %s100_s18, 1024, %s235_s1, [#allocation4]  }
  0x3f   :  { %196 = dma.done.wait [#allocation4], 1024  }
  0x40   :  { %197 = vsyncadd [#allocation4], 4294966272 }
  0x41   :  { %106 = vsyncpa [#allocation3], 1 }
  0x42   :  { %107 = vsyncpa [#allocation4], 1 }

</bundles_post_ra>
